<compile_context>
chip_gen: v7x
topology: tpu7x:2x2x1
jax: 0.10.0
libtpu: 0.0.40
codegen_flags: <defaults>
</compile_context>

<pallas_src>
import jax
import jax.numpy as jnp
from jax.experimental import pallas as pl
from jax.experimental.pallas import tpu as pltpu


# ----------------------------------------------------------------------------
# Kernel
# ----------------------------------------------------------------------------
def _eprop_alpha_l0rd_kernel(x_ref, h_ref, wx_ref, bx_ref, wh_gr_ref, wh_po_ref,
                             alpha_ref, out_ref):
    n = x_ref.shape[1]
    x = x_ref[...]                       # (rows, H)
    h = h_ref[...]                       # (rows, H)

    # One wide x-side matmul: [g | r | p | o] pre-activations, N = 4H.
    xz = jnp.dot(x, wx_ref[...], preferred_element_type=jnp.float32) + bx_ref[...]
    # h-side matmul for update gate + candidate, N = 2H.
    hz = jnp.dot(h, wh_gr_ref[...], preferred_element_type=jnp.float32)

    g = jnp.maximum(jnp.tanh(xz[:, 0:n] + hz[:, 0:n]), 0.0)        # ReTanh gate
    r = jnp.tanh(xz[:, n:2 * n] + hz[:, n:2 * n])                  # candidate
    h_new = g * r + (1.0 - g) * h                                  # gated state update

    # h_new-side matmul for output tanh + output gate, N = 2H.
    hz2 = jnp.dot(h_new, wh_po_ref[...], preferred_element_type=jnp.float32)
    p = jnp.tanh(xz[:, 2 * n:3 * n] + hz2[:, 0:n])
    q = pl.reciprocal(1.0 + jnp.exp(-(xz[:, 3 * n:4 * n] + hz2[:, n:2 * n])),
                      approx=True)                                 # sigmoid on EUP

    alpha = alpha_ref[0]                                           # SMEM scalar

    # Single lane-dense (rows, 2H) store: [ x + alpha*(p*q) | h_new ].
    out_ref[...] = jnp.concatenate([x + alpha * (p * q), h_new], axis=1)


# ----------------------------------------------------------------------------
# Wrapper
# ----------------------------------------------------------------------------
def _pick_row_block(m):
    for rb in (512, 256, 128, 64, 32, 16, 8):
        if rb <= m and m % rb == 0:
            return rb
    return m


def eprop_alpha_gate_l0rd(params, x, h):
    """Functional EpropAlphaGateL0rd step: returns (out, h_new)."""
    m, n = x.shape
    rb = _pick_row_block(m)
    grid = (m // rb,)

    vmem = pltpu.MemorySpace.VMEM
    row_spec = pl.BlockSpec((rb, n), lambda i: (i, 0), memory_space=vmem)
    out_spec = pl.BlockSpec((rb, 2 * n), lambda i: (i, 0), memory_space=vmem)

    def w_spec(shape):
        return pl.BlockSpec(shape, lambda i: (0, 0), memory_space=vmem)

    out = pl.pallas_call(
        _eprop_alpha_l0rd_kernel,
        out_shape=jax.ShapeDtypeStruct((m, 2 * n), jnp.float32),
        grid=grid,
        in_specs=[
            row_spec,                                             # x
            row_spec,                                             # h
            w_spec((n, 4 * n)),                                   # [W_gx|W_rx|W_px|W_ox]
            w_spec((1, 4 * n)),                                   # [b_g |b_r |b_p |b_o ]
            w_spec((n, 2 * n)),                                   # [W_gh|W_rh]
            w_spec((n, 2 * n)),                                   # [W_ph|W_oh]
            pl.BlockSpec(memory_space=pltpu.MemorySpace.SMEM),    # alpha scalar
        ],
        out_specs=out_spec,
        compiler_params=pltpu.CompilerParams(
            dimension_semantics=("parallel",)),
    )(x, h, params["wx"], params["bx"], params["wh_gr"], params["wh_po"],
      params["alpha"])

    return out[:, :n], out[:, n:]


# ----------------------------------------------------------------------------
# Parameters (pre-transposed (in, out) layout; packed for the fused matmuls)
# ----------------------------------------------------------------------------
def init_params(key, num_hidden):
    n = num_hidden
    ks = jax.random.split(key, 12)
    dense = lambda k: jax.random.normal(k, (n, n), jnp.float32) / jnp.sqrt(float(n))
    bias = lambda k: 0.1 * jax.random.normal(k, (1, n), jnp.float32)

    w_gx, w_gh, w_rx, w_rh, w_px, w_ph, w_ox, w_oh = (dense(k) for k in ks[:8])
    b_g, b_r, b_p, b_o = (bias(k) for k in ks[8:12])

    raw = dict(w_gx=w_gx, w_gh=w_gh, b_g=b_g, w_rx=w_rx, w_rh=w_rh, b_r=b_r,
               w_px=w_px, w_ph=w_ph, b_p=b_p, w_ox=w_ox, w_oh=w_oh, b_o=b_o)

    packed = {
        "wx": jnp.concatenate([w_gx, w_rx, w_px, w_ox], axis=1),   # (n, 4n)
        "bx": jnp.concatenate([b_g, b_r, b_p, b_o], axis=1),       # (1, 4n)
        "wh_gr": jnp.concatenate([w_gh, w_rh], axis=1),            # (n, 2n)
        "wh_po": jnp.concatenate([w_ph, w_oh], axis=1),            # (n, 2n)
        "alpha": jnp.full((1,), 1e-12, jnp.float32),               # nn.Parameter(zeros(1)+1e-12)
    }
    return raw, packed


# ----------------------------------------------------------------------------
# Pure-JAX reference (mirrors the PyTorch forward)
# ----------------------------------------------------------------------------
def ref_forward(raw, alpha, x, h):
    g = jnp.maximum(jnp.tanh(x @ raw["w_gx"] + h @ raw["w_gh"] + raw["b_g"]), 0.0)
    r = jnp.tanh(x @ raw["w_rx"] + h @ raw["w_rh"] + raw["b_r"])
    h_new = g * r + (1.0 - g) * h
    p = jnp.tanh(x @ raw["w_px"] + h_new @ raw["w_ph"] + raw["b_p"])
    q = jax.nn.sigmoid(x @ raw["w_ox"] + h_new @ raw["w_oh"] + raw["b_o"])
    return x + alpha * (p * q), h_new


# ----------------------------------------------------------------------------
# Main
# ----------------------------------------------------------------------------
if __name__ == "__main__":
    num_hidden = 64      # Loci: (gestalt_size + 4) * heads = (12 + 4) * 4
    batch_size = 16      # Loci: batch * num_objects = 2 * 8

    key = jax.random.PRNGKey(0)
    pkey, xkey = jax.random.split(key)
    raw, params = init_params(pkey, num_hidden)

    x = jax.random.normal(xkey, (batch_size, num_hidden), jnp.float32)
    h0 = jnp.zeros((batch_size, num_hidden), jnp.float32)   # initial recurrent state

    # Step 1: module as initialized (alpha = 1e-12).
    out, h_new = eprop_alpha_gate_l0rd(params, x, h0)
    jax.block_until_ready((out, h_new))

    ref_out, ref_h = ref_forward(raw, float(params["alpha"][0]), x, h0)
    assert out.shape == (batch_size, num_hidden)
    assert h_new.shape == (batch_size, num_hidden)
    assert bool(jnp.all(jnp.isfinite(out))) and bool(jnp.all(jnp.isfinite(h_new)))
    assert bool(jnp.allclose(out, ref_out, atol=1e-5, rtol=1e-5))
    assert bool(jnp.allclose(h_new, ref_h, atol=1e-5, rtol=1e-5))

    # Step 2: recurrence with a non-trivial alpha so the p/q output path is verified.
    params2 = dict(params, alpha=jnp.full((1,), 1.0, jnp.float32))
    out2, h_new2 = eprop_alpha_gate_l0rd(params2, x, h_new)
    jax.block_until_ready((out2, h_new2))

    ref_out2, ref_h2 = ref_forward(raw, 1.0, x, ref_h)
    assert bool(jnp.allclose(h_new2, ref_h2, atol=1e-5, rtol=1e-5))
    assert bool(jnp.allclose(out2, ref_out2, atol=5e-3, rtol=5e-3))  # approx reciprocal in sigmoid

    print("KERNEL_OK")
</pallas_src>

<mosaic_0001>
module attributes {stable_mosaic.version = 11 : i64} {
  func.func @_eprop_alpha_l0rd_kernel(%arg0: i32, %arg1: memref<16x64xf32, #tpu.memory_space<vmem>>, %arg2: memref<16x64xf32, #tpu.memory_space<vmem>>, %arg3: memref<64x256xf32, #tpu.memory_space<vmem>>, %arg4: memref<1x256xf32, #tpu.memory_space<vmem>>, %arg5: memref<64x128xf32, #tpu.memory_space<vmem>>, %arg6: memref<64x128xf32, #tpu.memory_space<vmem>>, %arg7: memref<1xf32, #tpu.memory_space<smem>>, %arg8: memref<16x128xf32, #tpu.memory_space<vmem>>) attributes {dimension_semantics = [#tpu.dimension_semantics<parallel>], iteration_bounds = array<i64: 1>, scalar_prefetch = 0 : i64, scratch_operands = 0 : i64, tpu.core_type = #tpu.core_type<tc>, window_params = [{transform_indices = @transform_0, window_bounds = array<i64: 16, 64>}, {transform_indices = @transform_1, window_bounds = array<i64: 16, 64>}, {pipeline_mode = #tpu.pipeline_mode<synchronous>, transform_indices = @transform_2, window_bounds = array<i64: 64, 256>}, {pipeline_mode = #tpu.pipeline_mode<synchronous>, transform_indices = @transform_3, window_bounds = array<i64: 1, 256>}, {pipeline_mode = #tpu.pipeline_mode<synchronous>, transform_indices = @transform_4, window_bounds = array<i64: 64, 128>}, {pipeline_mode = #tpu.pipeline_mode<synchronous>, transform_indices = @transform_5, window_bounds = array<i64: 64, 128>}, {transform_indices = @transform_6, window_bounds = array<i64: 1>}, {transform_indices = @transform_7, window_bounds = array<i64: 16, 128>}]} {
    %c0 = arith.constant 0 : index
    %c0_0 = arith.constant 0 : index
    %0 = vector.load %arg1[%c0, %c0_0] : memref<16x64xf32, #tpu.memory_space<vmem>>, vector<16x64xf32>
    %c0_1 = arith.constant 0 : index
    %c0_2 = arith.constant 0 : index
    %1 = vector.load %arg2[%c0_1, %c0_2] : memref<16x64xf32, #tpu.memory_space<vmem>>, vector<16x64xf32>
    %c0_3 = arith.constant 0 : index
    %c0_4 = arith.constant 0 : index
    %2 = vector.load %arg3[%c0_3, %c0_4] : memref<64x256xf32, #tpu.memory_space<vmem>>, vector<64x256xf32>
    %cst = arith.constant dense<0.000000e+00> : vector<16x256xf32>
    %3 = tpu.matmul %0, %2, %cst {dimension_numbers = #tpu.dot_dimension_numbers<[1], [0], [0], [1], [0, 0, 1, 1], [], []>} : vector<16x64xf32>, vector<64x256xf32>, vector<16x256xf32> -> vector<16x256xf32>
    %c0_5 = arith.constant 0 : index
    %c0_6 = arith.constant 0 : index
    %4 = vector.load %arg4[%c0_5, %c0_6] : memref<1x256xf32, #tpu.memory_space<vmem>>, vector<1x256xf32>
    %5 = vector.broadcast %4 : vector<1x256xf32> to vector<16x256xf32>
    %6 = arith.addf %3, %5 : vector<16x256xf32>
    %c0_7 = arith.constant 0 : index
    %c0_8 = arith.constant 0 : index
    %7 = vector.load %arg5[%c0_7, %c0_8] : memref<64x128xf32, #tpu.memory_space<vmem>>, vector<64x128xf32>
    %cst_9 = arith.constant dense<0.000000e+00> : vector<16x128xf32>
    %8 = tpu.matmul %1, %7, %cst_9 {dimension_numbers = #tpu.dot_dimension_numbers<[1], [0], [0], [1], [0, 0, 1, 1], [], []>} : vector<16x64xf32>, vector<64x128xf32>, vector<16x128xf32> -> vector<16x128xf32>
    %9 = vector.extract_strided_slice %6 {offsets = [0, 0], sizes = [16, 64], strides = [1, 1]} : vector<16x256xf32> to vector<16x64xf32>
    %10 = vector.extract_strided_slice %8 {offsets = [0, 0], sizes = [16, 64], strides = [1, 1]} : vector<16x128xf32> to vector<16x64xf32>
    %11 = arith.addf %9, %10 : vector<16x64xf32>
    %12 = math.tanh %11 : vector<16x64xf32>
    %cst_10 = arith.constant 0.000000e+00 : f32
    %13 = vector.broadcast %cst_10 : f32 to vector<16x64xf32>
    %14 = arith.maximumf %12, %13 : vector<16x64xf32>
    %15 = vector.extract_strided_slice %6 {offsets = [0, 64], sizes = [16, 64], strides = [1, 1]} : vector<16x256xf32> to vector<16x64xf32>
    %16 = vector.extract_strided_slice %8 {offsets = [0, 64], sizes = [16, 64], strides = [1, 1]} : vector<16x128xf32> to vector<16x64xf32>
    %17 = arith.addf %15, %16 : vector<16x64xf32>
    %18 = math.tanh %17 : vector<16x64xf32>
    %19 = arith.mulf %14, %18 : vector<16x64xf32>
    %cst_11 = arith.constant 1.000000e+00 : f32
    %20 = vector.broadcast %cst_11 : f32 to vector<16x64xf32>
    %21 = arith.subf %20, %14 : vector<16x64xf32>
    %22 = arith.mulf %21, %1 : vector<16x64xf32>
    %23 = arith.addf %19, %22 : vector<16x64xf32>
    %c0_12 = arith.constant 0 : index
    %c0_13 = arith.constant 0 : index
    %24 = vector.load %arg6[%c0_12, %c0_13] : memref<64x128xf32, #tpu.memory_space<vmem>>, vector<64x128xf32>
    %cst_14 = arith.constant dense<0.000000e+00> : vector<16x128xf32>
    %25 = tpu.matmul %23, %24, %cst_14 {dimension_numbers = #tpu.dot_dimension_numbers<[1], [0], [0], [1], [0, 0, 1, 1], [], []>} : vector<16x64xf32>, vector<64x128xf32>, vector<16x128xf32> -> vector<16x128xf32>
    %26 = vector.extract_strided_slice %6 {offsets = [0, 128], sizes = [16, 64], strides = [1, 1]} : vector<16x256xf32> to vector<16x64xf32>
    %27 = vector.extract_strided_slice %25 {offsets = [0, 0], sizes = [16, 64], strides = [1, 1]} : vector<16x128xf32> to vector<16x64xf32>
    %28 = arith.addf %26, %27 : vector<16x64xf32>
    %29 = math.tanh %28 : vector<16x64xf32>
    %30 = vector.extract_strided_slice %6 {offsets = [0, 192], sizes = [16, 64], strides = [1, 1]} : vector<16x256xf32> to vector<16x64xf32>
    %31 = vector.extract_strided_slice %25 {offsets = [0, 64], sizes = [16, 64], strides = [1, 1]} : vector<16x128xf32> to vector<16x64xf32>
    %32 = arith.addf %30, %31 : vector<16x64xf32>
    %cst_15 = arith.constant 0.000000e+00 : f32
    %33 = vector.broadcast %cst_15 : f32 to vector<16x64xf32>
    %34 = arith.subf %33, %32 : vector<16x64xf32>
    %35 = math.exp %34 : vector<16x64xf32>
    %cst_16 = arith.constant 1.000000e+00 : f32
    %36 = vector.broadcast %cst_16 : f32 to vector<16x64xf32>
    %37 = arith.addf %36, %35 : vector<16x64xf32>
    %38 = tpu.reciprocal %37 {approx = true} : vector<16x64xf32> -> vector<16x64xf32>
    %c0_17 = arith.constant 0 : index
    %39 = memref.load %arg7[%c0_17] : memref<1xf32, #tpu.memory_space<smem>>
    %40 = arith.mulf %29, %38 : vector<16x64xf32>
    %41 = vector.broadcast %39 : f32 to vector<16x64xf32>
    %42 = arith.mulf %41, %40 : vector<16x64xf32>
    %43 = arith.addf %0, %42 : vector<16x64xf32>
    %44 = tpu.concatenate %43, %23 in 1 : vector<16x64xf32>, vector<16x64xf32> -> vector<16x128xf32>
    %c0_18 = arith.constant 0 : index
    %c0_19 = arith.constant 0 : index
    %45 = vector.load %arg8[%c0_18, %c0_19] : memref<16x128xf32, #tpu.memory_space<vmem>>, vector<16x128xf32>
    tpu.vector_store %arg8[%c0_18, %c0_19], %44 {strides = array<i32>} : memref<16x128xf32, #tpu.memory_space<vmem>>, vector<16x128xf32>,
    return
  }
  func.func @transform_0(%arg0: i32) -> (i32, i32) {
    %c0_i32 = arith.constant 0 : i32
    %c0_i32_0 = arith.constant 0 : i32
    return %arg0, %c0_i32 : i32, i32
  }
  func.func @transform_1(%arg0: i32) -> (i32, i32) {
    %c0_i32 = arith.constant 0 : i32
    %c0_i32_0 = arith.constant 0 : i32
    return %arg0, %c0_i32 : i32, i32
  }
  func.func @transform_2(%arg0: i32) -> (i32, i32) {
    %c0_i32 = arith.constant 0 : i32
    %c0_i32_0 = arith.constant 0 : i32
    %c0_i32_1 = arith.constant 0 : i32
    return %c0_i32, %c0_i32_0 : i32, i32
  }
  func.func @transform_3(%arg0: i32) -> (i32, i32) {
    %c0_i32 = arith.constant 0 : i32
    %c0_i32_0 = arith.constant 0 : i32
    %c0_i32_1 = arith.constant 0 : i32
    return %c0_i32, %c0_i32_0 : i32, i32
  }
  func.func @transform_4(%arg0: i32) -> (i32, i32) {
    %c0_i32 = arith.constant 0 : i32
    %c0_i32_0 = arith.constant 0 : i32
    %c0_i32_1 = arith.constant 0 : i32
    return %c0_i32, %c0_i32_0 : i32, i32
  }
  func.func @transform_5(%arg0: i32) -> (i32, i32) {
    %c0_i32 = arith.constant 0 : i32
    %c0_i32_0 = arith.constant 0 : i32
    %c0_i32_1 = arith.constant 0 : i32
    return %c0_i32, %c0_i32_0 : i32, i32
  }
  func.func @transform_6(%arg0: i32) -> i32 {
    %c0_i32 = arith.constant 0 : i32
    %c0_i32_0 = arith.constant 0 : i32
    return %c0_i32 : i32
  }
  func.func @transform_7(%arg0: i32) -> (i32, i32) {
    %c0_i32 = arith.constant 0 : i32
    %c0_i32_0 = arith.constant 0 : i32
    return %arg0, %c0_i32 : i32, i32
  }
}

</mosaic_0001>

<bundles_post_ra>
// kernel: tpu_custom_call.1
= control target key start
LH: loop header
LB: loop body
LE: loop exit
PB: predicated region body
PF: predicated region fallthrough
CT: control target
= control target key end

     0   :  { %13 = vsyncpa [#allocation4], 0  ;;  %s936_s0 = inlined_call_operand.hbm [shape: f32[16,64], index: 0, kind: input, shape index: {}]   ;;  %s937_s1 = inlined_call_operand.hbm [shape: f32[16,64], index: 1, kind: input, shape index: {}]   ;;  %s938_s2 = inlined_call_operand.hbm [shape: f32[64,256], index: 2, kind: input, shape index: {}]   ;;  %s939_s3 = inlined_call_operand.vmem [shape: f32[1,256], index: 3, kind: input, shape index: {}]   ;;  %s940_s4 = inlined_call_operand.hbm [shape: f32[64,128], index: 4, kind: input, shape index: {}]   ;;  %s941_s5 = inlined_call_operand.hbm [shape: f32[64,128], index: 5, kind: input, shape index: {}]   ;;  %s942_s6 = inlined_call_operand.<no memory space> [shape: f32[1], index: 6, kind: input, shape index: {}]   ;;  %s943_s7 = inlined_call_operand.hbm [shape: f32[16,128], index: 7, kind: output, shape index: {}]  }
   0x1   :  { %14 = vsyncpa [#allocation7], 0 }
   0x2   :  { %15 = vsyncpa [#allocation10], 0 }
   0x3   :  { %16 = vsyncpa [#allocation5], 0  ;;  %s751_s24 = smov [#allocation6]   ;;  %s752_s26 = smov [#allocation9]  }
   0x4   :  { %s34_s25 = sshll.u32 %s751_s24, 4  ;;  %s60_s27 = sshll.u32 %s752_s26, 4  ;;  %s35_s25 = int_to_ptr.vmem [resolvable:$true] %s34_s25  ;;  %s803_s27 = int_to_ptr.vmem [resolvable:$true] %s60_s27 }
   0x5   :  { %s611_s30 = scalar_lea.hbm %s937_s1, 256 }
   0x6   :  { %p612_p0 = scmp.ne.s32.totalorder %s937_s1, %s611_s30  ;;  %p615_p1 = scmp.lt.u32.totalorder %s611_s30, %s937_s1 }
   0x8   :  { %p617_p2 = pnand %p615_p1, %p612_p0 }
   0xa   :  { %620 = shalt.err (!%p617_p2)
}
   0xb   :  { %s621_s12 = scalar_lea.vmem %s35_s25, 256  ;;  %p626_p4 = scmp.lt.s32.totalorder %s35_s25, %s35_s25 }
   0xc   :  { %p622_p3 = scmp.ne.s32.totalorder %s35_s25, %s621_s12  ;;  %p627_p5 = scmp.lt.s32.totalorder %s621_s12, %s621_s12 }
   0xe   :  { %p628_p6 = por %p627_p5, %p626_p4 }
  0x10   :  { %p629_p7 = pnand %p628_p6, %p622_p3 }
  0x12   :  { %632 = shalt.err (!%p629_p7)
}
  0x13   :  { %s753_s13 = smov 128   ;;  %s754_s14 = smov 8  }
  0x14   :  { %40 = dma.hbm_to_vmem [thread:$0]  %s937_s1, 256, %s35_s25, [#allocation7], %s753_s13, %s753_s13, %s754_s14  }
  0x15   :  { %s633_s19 = scalar_lea.hbm %s940_s4, 1024 }
  0x16   :  { %p634_p8 = scmp.ne.s32.totalorder %s940_s4, %s633_s19  ;;  %p637_p9 = scmp.lt.u32.totalorder %s633_s19, %s940_s4 }
  0x18   :  { %p639_p10 = pnand %p637_p9, %p634_p8 }
  0x1a   :  { %642 = shalt.err (!%p639_p10)
}
  0x1b   :  { %s643_s24 = scalar_lea.vmem %s803_s27, 1024  ;;  %p648_p12 = scmp.lt.s32.totalorder %s803_s27, %s803_s27 }
  0x1c   :  { %p644_p11 = scmp.ne.s32.totalorder %s803_s27, %s643_s24  ;;  %p649_p13 = scmp.lt.s32.totalorder %s643_s24, %s643_s24 }
  0x1e   :  { %p650_p0 = por %p649_p13, %p648_p12 }
  0x20   :  { %p651_p1 = pnand %p650_p0, %p644_p11 }
  0x22   :  { %654 = shalt.err (!%p651_p1)
}
  0x23   :  { %66 = dma.hbm_to_vmem [thread:$0]  %s940_s4, 1024, %s803_s27, [#allocation10], %s753_s13, %s753_s13, %s754_s14  }
  0x24   :  { %s755_s26 = smov [#allocation3]   ;;  %s756_s29 = smov [#allocation8]  }
  0x25   :  { %s22_s28 = sshll.u32 %s755_s26, 4  ;;  %s46_s30 = sshll.u32 %s756_s29, 4  ;;  %s23_s28 = int_to_ptr.vmem [resolvable:$true] %s22_s28  ;;  %s840_s30 = int_to_ptr.vmem [resolvable:$true] %s46_s30 }
  0x26   :  { %s655_s10 = scalar_lea.hbm %s936_s0, 256 }
  0x27   :  { %p656_p2 = scmp.ne.s32.totalorder %s936_s0, %s655_s10  ;;  %p659_p3 = scmp.lt.u32.totalorder %s655_s10, %s936_s0 }
  0x29   :  { %p661_p4 = pnand %p659_p3, %p656_p2 }
  0x2b   :  { %664 = shalt.err (!%p661_p4)
}
  0x2c   :  { %s665_s4 = scalar_lea.vmem %s23_s28, 256  ;;  %p670_p6 = scmp.lt.s32.totalorder %s23_s28, %s23_s28 }
  0x2d   :  { %p666_p5 = scmp.ne.s32.totalorder %s23_s28, %s665_s4  ;;  %p671_p7 = scmp.lt.s32.totalorder %s665_s4, %s665_s4 }
  0x2f   :  { %p672_p8 = por %p671_p7, %p670_p6 }
  0x31   :  { %p673_p9 = pnand %p672_p8, %p666_p5 }
  0x33   :  { %676 = shalt.err (!%p673_p9)
}
  0x34   :  { %28 = dma.hbm_to_vmem [thread:$0]  %s936_s0, 256, %s23_s28, [#allocation4], %s753_s13, %s753_s13, %s754_s14  }
  0x35   :  { %s677_s20 = scalar_lea.hbm %s938_s2, 2048 }
  0x36   :  { %p678_p10 = scmp.ne.s32.totalorder %s938_s2, %s677_s20  ;;  %p681_p11 = scmp.lt.u32.totalorder %s677_s20, %s938_s2 }
  0x38   :  { %p683_p12 = pnand %p681_p11, %p678_p10 }
  0x3a   :  { %686 = shalt.err (!%p683_p12)
}
  0x3b   :  { %s687_s1 = scalar_lea.vmem %s840_s30, 2048  ;;  %p692_p0 = scmp.lt.s32.totalorder %s840_s30, %s840_s30 }
  0x3c   :  { %p688_p13 = scmp.ne.s32.totalorder %s840_s30, %s687_s1  ;;  %p693_p1 = scmp.lt.s32.totalorder %s687_s1, %s687_s1 }
  0x3e   :  { %p694_p2 = por %p693_p1, %p692_p0 }
  0x40   :  { %p695_p3 = pnand %p694_p2, %p688_p13 }
  0x42   :  { %698 = shalt.err (!%p695_p3)
}
  0x43   :  { %s757_s0 = smov 256   ;;  %s758_s25 = smov 16  }
  0x44   :  { %52 = dma.hbm_to_vmem [thread:$0]  %s938_s2, 2048, %s840_s30, [#allocation7], %s757_s0, %s757_s0, %s758_s25  }
  0x45   :  { %s759_s29 = smov [#allocation11]   ;;  %s699_s11 = scalar_lea.hbm %s941_s5, 1024 }
  0x46   :  { %s72_s8 = sshll.u32 %s759_s29, 4  ;;  %p700_p4 = scmp.ne.s32.totalorder %s941_s5, %s699_s11  ;;  %s73_s8 = int_to_ptr.vmem [resolvable:$true] %s72_s8 }
  0x47   :  { %p703_p5 = scmp.lt.u32.totalorder %s699_s11, %s941_s5 }
  0x49   :  { %p705_p6 = pnand %p703_p5, %p700_p4 }
  0x4b   :  { %708 = shalt.err (!%p705_p6)
}
  0x4c   :  { %s709_s27 = scalar_lea.vmem %s73_s8, 1024  ;;  %p714_p8 = scmp.lt.s32.totalorder %s73_s8, %s73_s8 }
  0x4d   :  { %p710_p7 = scmp.ne.s32.totalorder %s73_s8, %s709_s27  ;;  %p715_p9 = scmp.lt.s32.totalorder %s709_s27, %s709_s27 }
  0x4f   :  { %p716_p10 = por %p715_p9, %p714_p8 }
  0x51   :  { %p717_p11 = pnand %p716_p10, %p710_p7 }
  0x53   :  { %720 = shalt.err (!%p717_p11)
}
  0x54   :  { %78 = dma.hbm_to_vmem [thread:$0]  %s941_s5, 1024, %s73_s8, [#allocation10], %s753_s13, %s753_s13, %s754_s14  }
  0x55   :  { %743 = dma.done.wait [#allocation4], 256  }
  0x56   :  { %744 = vsyncadd [#allocation4], 4294967040 }
  0x57   :  { %745 = dma.done.wait [#allocation7], 2304  }
  0x58   :  { %746 = vsyncadd [#allocation7], 4294964992 }
  0x59   :  { %747 = dma.done.wait [#allocation10], 2048  }
  0x5a   :  { %748 = vsyncadd [#allocation10], 4294965248  ;;  %v760_v0 = vmov 0.0   ;;  %v101_v1 = vld [vmem:[#allocation8 + $0x8] sm:$0xff]  ;;  %v103_v2 = vld [vmem:[#allocation8 + $0x18] sm:$0xff]  ;;  %vm128_vm0 = vcmask 523264   ;;  %v118_v47 = vlaneseq }
  0x5b   :  { %199 = vmatprep.mubr.f32.mxu0 %v760_v0  ;;  %v212_v3 = vld [vmem:[#allocation9] sm:$0xff]  ;;  %v535_v4 = vpack.c.bf16 %v103_v2, %v101_v1  ;;  %v213_v5 = vld [vmem:[#allocation9 + $0x8] sm:$0xff]  ;;  %v102_v7 = vld [vmem:[#allocation8 + $0x10] sm:$0xff]  ;;  %s762_s20 = smov [#allocation12]  }
  0x5c   :  { %v100_v6 = vld [vmem:[#allocation8] sm:$0xff]  ;;  %v551_v8 = vpack.c.bf16 %v213_v5, %v212_v3  ;;  %v105_v10 = vld [vmem:[#allocation8 + $0x28] sm:$0xff]  ;;  %v107_v11 = vld [vmem:[#allocation8 + $0x38] sm:$0xff]  ;;  %v119_v48 = vshrl.u32 %v118_v47, 7  ;;  %s457_s21 = sshll.u32 %s762_s20, 4  ;;  %s458_s21 = int_to_ptr.vmem [resolvable:$true] %s457_s21 }
  0x5d   :  { %v537_v9 = vpack.c.bf16 %v102_v7, %v100_v6  ;;  %v214_v12 = vld [vmem:[#allocation9 + $0x10] sm:$0xff]  ;;  %536 = vmatprep.subr.bf16.mxu0 %v535_v4  ;;  %v539_v13 = vpack.c.bf16 %v107_v11, %v105_v10  ;;  %v215_v14 = vld [vmem:[#allocation9 + $0x18] sm:$0xff]  ;;  %v104_v15 = vld [vmem:[#allocation8 + $0x20] sm:$0xff]  ;;  %p726_p13 = scmp.lt.s32.totalorder %s458_s21, %s458_s21 }
  0x5e   :  { %v106_v16 = vld [vmem:[#allocation8 + $0x30] sm:$0xff]  ;;  %552 = vmatprep.subr.bf16.mxu1 %v551_v8  ;;  %v555_v17 = vpack.c.bf16 %v215_v14, %v214_v12  ;;  %v109_v19 = vld [vmem:[#allocation8 + $0x48] sm:$0xff]  ;;  %v111_v20 = vld [vmem:[#allocation8 + $0x58] sm:$0xff]  ;;  %v120_v49 = vsub.s32 0, %v119_v48 }
  0x5f   :  { %538 = vmatpush1.bf16.msra.mxu0 %v537_v9  ;;  %v541_v18 = vpack.c.bf16 %v106_v16, %v104_v15  ;;  %v216_v21 = vld [vmem:[#allocation9 + $0x20] sm:$0xff]  ;;  %554 = vmatpush3.bf16.msra.mxu1 %v551_v8  ;;  %v543_v22 = vpack.c.bf16 %v111_v20, %v109_v19  ;;  %v217_v23 = vld [vmem:[#allocation9 + $0x28] sm:$0xff]  ;;  %v110_v25 = vld [vmem:[#allocation8 + $0x50] sm:$0xff] }
  0x60   :  { %540 = vmatprep.subr.bf16.mxu0 %v539_v13  ;;  %v108_v24 = vld [vmem:[#allocation8 + $0x40] sm:$0xff]  ;;  %556 = vmatprep.subr.bf16.mxu1 %v555_v17  ;;  %v559_v26 = vpack.c.bf16 %v217_v23, %v216_v21  ;;  %v113_v27 = vld [vmem:[#allocation8 + $0x68] sm:$0xff]  ;;  %v115_v28 = vld [vmem:[#allocation8 + $0x78] sm:$0xff] }
  0x61   :  { %v218_v29 = vld [vmem:[#allocation9 + $0x30] sm:$0xff]  ;;  %v219_v30 = vld [vmem:[#allocation9 + $0x38] sm:$0xff]  ;;  %v545_v31 = vpack.c.bf16 %v110_v25, %v108_v24  ;;  %v547_v33 = vpack.c.bf16 %v115_v28, %v113_v27  ;;  %v112_v34 = vld [vmem:[#allocation8 + $0x60] sm:$0xff] }
  0x62   :  { %v889_v32 = vld [vmem:[#allocation6] sm:$0xff]  ;;  %v563_v36 = vpack.c.bf16 %v219_v30, %v218_v29  ;;  %v893_v38 = vld [vmem:[#allocation3] sm:$0xff]  ;;  %v99_v39 = vld [vmem:[#allocation6 + $0x8] sm:$0xff] }
  0x63   :  { %542 = vmatpush1.bf16.msra.mxu0 %v541_v18  ;;  %558 = vmatpush3.bf16.msra.mxu1 %v555_v17  ;;  %v114_v35 = vld [vmem:[#allocation8 + $0x70] sm:$0xff]  ;;  %v898_v40 = vld [vmem:[#allocation3 + $0x8] sm:$0xff]  ;;  %v323_v41 = vld [vmem:[#allocation11] sm:$0xff]  ;;  %v124_v18 = vsub.s32 1, %v119_v48 }
  0x64   :  { %544 = vmatprep.subr.bf16.mxu0 %v543_v22  ;;  %560 = vmatprep.subr.bf16.mxu1 %v559_v26  ;;  %v549_v37 = vpack.c.bf16 %v114_v35, %v112_v34  ;;  %v324_v42 = vld [vmem:[#allocation11 + $0x8] sm:$0xff]  ;;  %v325_v43 = vld [vmem:[#allocation11 + $0x10] sm:$0xff]  ;;  %v326_v45 = vld [vmem:[#allocation11 + $0x18] sm:$0xff] }
  0x65   :  { %513 = vmatprep.mubr.msk.f32.mxu1 %vm128_vm0, %v889_v32  ;;  %v567_v44 = vpack.c.bf16 %v324_v42, %v323_v41  ;;  %v571_v46 = vpack.c.bf16 %v326_v45, %v325_v43  ;;  %v116_v50 = vld [vmem:[%s939_s3] sm:$0x3]  ;;  %v328_v57 = vld [vmem:[#allocation11 + $0x28] sm:$0xff]  ;;  %v330_v1 = vld [vmem:[#allocation11 + $0x38] sm:$0xff]  ;;  %s761_s3 = smov 64  }
  0x66   :  { %v121_v51 = vrot.slane %v116_v50, %v120_v49  ;;  %v327_v56 = vld [vmem:[#allocation11 + $0x20] sm:$0xff]  ;;  %v125_v19 = vrot.slane %v116_v50, %v124_v18 }
  0x67   :  { %546 = vmatpush1.bf16.msra.mxu0 %v545_v31  ;;  %562 = vmatpush3.bf16.msra.mxu1 %v559_v26  ;;  %v575_v59 = vpack.c.bf16 %v328_v57, %v327_v56 }
  0x68   :  { %548 = vmatprep.subr.bf16.mxu0 %v547_v33  ;;  %564 = vmatprep.subr.bf16.mxu1 %v563_v36 }
  0x6b   :  { %550 = vmatpush1.bf16.msra.mxu0 %v549_v37  ;;  %566 = vmatpush3.bf16.msra.mxu1 %v563_v36  ;;  %v437_v37 = vstv %s942_s6  ;;  %s721_s6 = scalar_lea.vmem %s458_s21, 256 }
  0x6c   :  { %568 = vmatprep.subr.bf16.mxu0 %v567_v44  ;;  %p722_p12 = scmp.ne.s32.totalorder %s458_s21, %s721_s6  ;;  %p727_p0 = scmp.lt.s32.totalorder %s721_s6, %s721_s6 }
  0x6e   :  { %471 = vmatmul.mubr.msk.f32.vlgmr.msra.gmra.mrb[0].mxu0 %vm128_vm0, %v893_v38  ;;  %514 = vmatmul.mubr.msk.f32.vlgmr.msra.gmra.mrb[0].mxu1 %vm128_vm0, %v99_v39  ;;  %p728_p1 = por %p727_p0, %p726_p13 }
  0x6f   :  { %205 = vmatprep.mubr.f32.mxu0 %v760_v0  ;;  %570 = vmatpush3.bf16.msra.mxu0 %v567_v44  ;;  %v329_v0 = vld [vmem:[#allocation11 + $0x30] sm:$0xff] }
  0x70   :  { %572 = vmatprep.subr.bf16.mxu0 %v571_v46  ;;  %v579_v2 = vpack.c.bf16 %v330_v1, %v329_v0  ;;  %p729_p2 = pnand %p728_p1, %p722_p12 }
  0x72   :  { %472 = vmatmul.mubr.msk.f32.gmra.mrb[2].mxu0 %vm128_vm0, %v898_v40 }
  0x73   :  { %574 = vmatpush3.bf16.msra.mxu0 %v571_v46 }
  0x74   :  { %576 = vmatprep.subr.bf16.mxu0 %v575_v59 }
  0x77   :  { %578 = vmatpush3.bf16.msra.mxu0 %v575_v59 }
  0x78   :  { %580 = vmatprep.subr.bf16.mxu0 %v579_v2 }
  0x7b   :  { %582 = vmatpush3.bf16.msra.mxu0 %v579_v2 }
 0x141   :  { %v201_v52 = vpop.f32.mrb[0].mxu0  ;;  %v515_v54 = vpop.f32.mrb[0].mxu1 }
 0x142   :  { %v202_v53 = vadd.f32 %v201_v52, %v121_v51  ;;  %v203_v55 = vpop.f32.mrb[1].mxu0  ;;  %v292_v58 = vpop.f32.mrb[1].mxu1 }
 0x143   :  { %v204_v21 = vadd.f32 %v203_v55, %v125_v19 }
 0x144   :  { %v301_v60 = vadd.f32 %v292_v58, %v202_v53 }
 0x145   :  { %v207_v61 = vpop.f32.mrb[2].mxu0 }
 0x146   :  { %595 = vtanh.f32 %v301_v60  ;;  %v208_v62 = vadd.f32 %v207_v61, %v121_v51  ;;  %v209_v63 = vpop.f32.mrb[3].mxu0 }
 0x147   :  { %v210_v20 = vadd.f32 %v209_v63, %v125_v19 }
 0x148   :  { %v302_v3 = vadd.f32 %v515_v54, %v208_v62 }
 0x14a   :  { %597 = vtanh.f32 %v302_v3 }
 0x150   :  { %v596_v4 = vpop.eup %595 }
 0x151   :  { %309 = vrot.lane.b32.xlu0 %v596_v4, %s761_s3  ;;  %v305_v6 = vmax.f32 %v596_v4, 0.0 }
 0x153   :  { %v317_v7 = vsub.f32 1.0, %v305_v6 }
 0x154   :  { %v598_v5 = vpop.eup %597 }
 0x155   :  { %311 = vrot.lane.b32.xlu0 %v598_v5, %s761_s3  ;;  %v306_v8 = vmax.f32 %v598_v5, 0.0  ;;  %v319_v11 = vmul.f32 %v317_v7, %v889_v32 }
 0x157   :  { %v318_v12 = vsub.f32 1.0, %v306_v8 }
 0x159   :  { %v320_v15 = vmul.f32 %v318_v12, %v99_v39 }
 0x1c3   :  { %v310_v9 = vpop.permute.xlu0 %309 }
 0x1c4   :  { %v315_v10 = vmul.f32 %v310_v9, %v305_v6 }
 0x1c6   :  { %v321_v13 = vadd.f32 %v319_v11, %v315_v10 }
 0x1c7   :  { %v312_v14 = vpop.permute.xlu0 %311 }
 0x1c8   :  { %v316_v16 = vmul.f32 %v312_v14, %v306_v8  ;;  %442 = vrot.lane.b32.xlu0 %v321_v13, %s761_s3  ;;  %532 = vmatprep.mubr.msk.f32.mxu0 %vm128_vm0, %v321_v13 }
 0x1ca   :  { %v322_v17 = vadd.f32 %v320_v15, %v316_v16 }
 0x1cc   :  { %533 = vmatmul.mubr.msk.f32.vlgmr.msra.gmra.mrb[4].mxu0 %vm128_vm0, %v322_v17 }
 0x23a   :  { %v443_v47 = vpop.permute.xlu0 %442 }
 0x29f   :  { %v534_v22 = vpop.f32.mrb[4].mxu0 }
 0x2a0   :  { %v413_v23 = vadd.f32 %v534_v22, %v210_v20  ;;  %v403_v24 = vpop.f32.mrb[5].mxu0 }
 0x2a1   :  { %v412_v25 = vadd.f32 %v403_v24, %v204_v21 }
 0x2a2   :  { %v417_v26 = vsub.f32 0.0, %v413_v23 }
 0x2a3   :  { %v416_v27 = vsub.f32 0.0, %v412_v25 }
 0x2a4   :  { %v420_v28 = vmul.f32 1.442695, %v417_v26 }
 0x2a5   :  { %v418_v29 = vmul.f32 1.442695, %v416_v27 }
 0x2a6   :  { %599 = vpow2.f32 %v420_v28 }
 0x2a7   :  { %601 = vpow2.f32 %v418_v29 }
 0x2b0   :  { %v600_v30 = vpop.eup %599 }
 0x2b1   :  { %v602_v31 = vpop.eup %601  ;;  %v423_v33 = vadd.f32 1.0, %v600_v30 }
 0x2b2   :  { %v422_v32 = vadd.f32 1.0, %v602_v31 }
 0x2b4   :  { %603 = vrcp.f32 %v422_v32 }
 0x2b5   :  { %605 = vrcp.f32 %v423_v33 }
 0x2b6   :  { %607 = vtanh.f32 %v412_v25 }
 0x2b7   :  { %609 = vtanh.f32 %v413_v23 }
 0x2be   :  { %v604_v34 = vpop.eup %603 }
 0x2bf   :  { %429 = vrot.lane.b32.xlu1 %v604_v34, %s761_s3  ;;  %v606_v35 = vpop.eup %605 }
 0x2c0   :  { %v608_v36 = vpop.eup %607 }
 0x2c1   :  { %v610_v43 = vpop.eup %609 }
 0x2c3   :  { %431 = vrot.lane.b32.xlu1 %v606_v35, %s761_s3 }
 0x2c7   :  { %444 = vrot.lane.b32.xlu1 %v322_v17, %s761_s3 }
 0x331   :  { %v430_v39 = vpop.permute.xlu1 %429 }
 0x332   :  { %v435_v41 = vmul.f32 %v608_v36, %v430_v39 }
 0x334   :  { %v438_v42 = vmul.f32 %v437_v37, %v435_v41 }
 0x335   :  { %v432_v44 = vpop.permute.xlu1 %431 }
 0x336   :  { %v440_v45 = vadd.f32 %v438_v42, %v893_v38  ;;  %v436_v46 = vmul.f32 %v610_v43, %v432_v44 }
 0x338   :  { %v439_v48 = vmul.f32 %v437_v37, %v436_v46  ;;  %v448_v49 = vsel %vm128_vm0, %v440_v45, %v443_v47 }
 0x339   :  { %450 = vst [vmem:[#allocation12] sm:$0xff] %v448_v49  ;;  %v445_v51 = vpop.permute.xlu1 %444 }
 0x33a   :  { %v441_v50 = vadd.f32 %v439_v48, %v898_v40 }
 0x33c   :  { %v449_v52 = vsel %vm128_vm0, %v441_v50, %v445_v51 }
 0x33d   :  { %451 = vst [vmem:[#allocation12 + $0x8] sm:$0xff] %v449_v52 }
 0x33e   :  { %732 = shalt.err (!%p729_p2)
}
 0x33f   :  { %s733_s24 = scalar_lea.hbm %s943_s7, 256 }
 0x340   :  { %p734_p3 = scmp.ne.s32.totalorder %s943_s7, %s733_s24  ;;  %p737_p4 = scmp.lt.u32.totalorder %s733_s24, %s943_s7 }
 0x342   :  { %p739_p5 = pnand %p737_p4, %p734_p3 }
 0x344   :  { %742 = shalt.err (!%p739_p5)
}
 0x345   :  { %463 = dma.vmem_to_hbm [thread:$0]  %s458_s21, 256, %s943_s7, [#allocation5], %s753_s13, %s753_s13, %s754_s14  }
 0x346   :  { %749 = dma.done.wait [#allocation5], 256  }
 0x347   :  { %750 = vsyncadd [#allocation5], 4294967040 }
 0x348   :  { %467 = vsyncpa [#allocation4], 1 }
 0x349   :  { %468 = vsyncpa [#allocation7], 1 }
 0x34a   :  { %469 = vsyncpa [#allocation10], 1 }
 0x34b   :  { %470 = vsyncpa [#allocation5], 1 }

</bundles_post_ra>
